<compile_context>
chip_gen: v7x
topology: tpu7x:2x2x1
jax: 0.10.0
libtpu: 0.0.40
codegen_flags: <defaults>
</compile_context>

<pallas_src>
import functools

import jax
import jax.numpy as jnp
from jax.experimental import pallas as pl
from jax.experimental.pallas import tpu as pltpu

EPS = 1e-5                 # PyTorch BatchNorm2d default
MXU_DTYPE = jnp.bfloat16   # matmul input dtype; accumulation stays f32


# --------------------------------------------------------------------------
# Pallas kernel: fused (conv-as-matmul) + BatchNorm(train) + Sigmoid
# --------------------------------------------------------------------------
def _conv_bn_sigmoid_kernel(w_ref, p_ref, g_ref, b_ref, o_ref):
    # w: [Cout, K], p: [K, M], g/b: [Cout, 1]  ->  o: [Cout, M]
    acc = jnp.dot(w_ref[...], p_ref[...], preferred_element_type=jnp.float32)
    m = acc.shape[1]
    # One-pass batch statistics over M = N*Ho*Wo (per output channel row).
    s1 = jnp.sum(acc, axis=1, keepdims=True)
    s2 = jnp.sum(acc * acc, axis=1, keepdims=True)
    mean = s1 * (1.0 / m)
    var = jnp.maximum(s2 * (1.0 / m) - mean * mean, 0.0)
    inv = jax.lax.rsqrt(var + EPS)
    o_ref[...] = jax.nn.sigmoid((acc - mean) * inv * g_ref[...] + b_ref[...])


def fused_conv_bn_sigmoid(w2, patches, gamma, beta):
    """sigmoid(BN_train(w2 @ patches)) with lane-dense [Cout, M] output.

    w2: [Cout, K] f32, patches: [K, M] f32, gamma/beta: [Cout].
    Everything fits one VMEM block at these sizes, so a single grid step.
    """
    Cout, K = w2.shape
    K2, M = patches.shape
    assert K == K2
    # TODO(synk): for large M, switch to a two-phase grid over M (phase 1
    # accumulates sum/sum-of-squares into VMEM scratch, phase 2 normalizes),
    # which also lets v7x's two TensorCores split the work.
    return pl.pallas_call(
        _conv_bn_sigmoid_kernel,
        out_shape=jax.ShapeDtypeStruct((Cout, M), jnp.float32),
        grid=(1,),
        in_specs=[
            pl.BlockSpec((Cout, K), lambda i: (0, 0)),
            pl.BlockSpec((K, M), lambda i: (0, 0)),
            pl.BlockSpec((Cout, 1), lambda i: (0, 0)),
            pl.BlockSpec((Cout, 1), lambda i: (0, 0)),
        ],
        out_specs=pl.BlockSpec((Cout, M), lambda i: (0, 0)),
        compiler_params=pltpu.CompilerParams(
            dimension_semantics=("arbitrary",)),
    )(
        w2.astype(MXU_DTYPE),
        patches.astype(MXU_DTYPE),
        gamma.reshape(Cout, 1).astype(jnp.float32),
        beta.reshape(Cout, 1).astype(jnp.float32),
    )


# --------------------------------------------------------------------------
# JAX glue: im2col in CNHW layout (K rows, M = N*Ho*Wo lanes), conv wrappers
# --------------------------------------------------------------------------
def _im2col_cnhw(x_cnhw, kh, kw, pad_t, pad_b, pad_l, pad_r):
    """x: [C, N, H, W] -> patches [C*kh*kw, N*Ho*Wo]."""
    x = jnp.pad(x_cnhw, ((0, 0), (0, 0), (pad_t, pad_b), (pad_l, pad_r)))
    C, N, Hp, Wp = x.shape
    Ho, Wo = Hp - kh + 1, Wp - kw + 1
    taps = [x[:, :, i:i + Ho, j:j + Wo] for i in range(kh) for j in range(kw)]
    p = jnp.stack(taps, axis=1)             # [C, kh*kw, N, Ho, Wo]
    return p.reshape(C * kh * kw, N * Ho * Wo), N, Ho, Wo


def conv_bn_sigmoid(x_cnhw, w, gamma, beta, pad):
    """Conv2d(w:[Cout,Cin,kh,kw], stride 1) + BN(train) + Sigmoid, CNHW io.

    The conv bias is intentionally not applied: train-mode BN cancels it.
    """
    kh, kw = w.shape[2], w.shape[3]
    patches, N, Ho, Wo = _im2col_cnhw(x_cnhw, kh, kw, pad, pad, pad, pad)
    w2 = w.reshape(w.shape[0], -1)                        # [Cout, Cin*kh*kw]
    y = fused_conv_bn_sigmoid(w2, patches, gamma, beta)   # [Cout, M]
    return y.reshape(-1, N, Ho, Wo)                       # CNHW


def convT_bn_sigmoid(x_cnhw, wt, gamma, beta, k, pad, stride, output_padding):
    """ConvTranspose2d(wt:[Cin,Cout,k,k]) + BN(train) + Sigmoid, CNHW io.

    Lowered to: dilate input by `stride`, pad by (k-1-pad) (+output_padding on
    bottom/right), then a stride-1 conv with the spatially-flipped, transposed
    weight.  Bias dropped (cancelled by train-mode BN).
    """
    # TODO(synk): sub-pixel (stride^2 sub-filter) decomposition would avoid
    # the 75% zero MACs introduced by the dilation below.
    C, N, H, W = x_cnhw.shape
    Hd, Wd = (H - 1) * stride + 1, (W - 1) * stride + 1
    xd = jnp.zeros((C, N, Hd, Wd), x_cnhw.dtype)
    xd = xd.at[:, :, ::stride, ::stride].set(x_cnhw)
    p0 = k - 1 - pad
    p1 = k - 1 - pad + output_padding
    patches, N, Ho, Wo = _im2col_cnhw(xd, k, k, p0, p1, p0, p1)
    w_eq = jnp.flip(wt, axis=(2, 3)).transpose(1, 0, 2, 3)  # [Cout, Cin, k, k]
    w2 = w_eq.reshape(w_eq.shape[0], -1)
    y = fused_conv_bn_sigmoid(w2, patches, gamma, beta)
    return y.reshape(-1, N, Ho, Wo)


# --------------------------------------------------------------------------
# decoder_block: params + forward
# --------------------------------------------------------------------------
def init_decoder_block(key, in_channels, out_channels, kernel_size):
    ks = jax.random.split(key, 6)
    s = 0.1
    return {
        # down: Conv2d(in*2 -> in, 3x3, pad 1, stride 1) + BN(in)
        "down_w": s * jax.random.normal(ks[0], (in_channels, in_channels * 2, 3, 3), jnp.float32),
        # Conv / ConvTranspose biases are kept for parameter parity with the
        # PyTorch module but never applied: train-mode BatchNorm subtracts the
        # batch mean, which cancels any per-channel constant bias exactly.
        "down_b": s * jax.random.normal(ks[1], (in_channels,), jnp.float32),
        "down_gamma": jnp.ones((in_channels,), jnp.float32),
        "down_beta": jnp.zeros((in_channels,), jnp.float32),
        # up1 / up2: ConvTranspose2d(in -> out, k, pad, stride) + BN(out)
        "up1_w": s * jax.random.normal(ks[2], (in_channels, out_channels, kernel_size, kernel_size), jnp.float32),
        "up1_b": s * jax.random.normal(ks[3], (out_channels,), jnp.float32),
        "up1_gamma": jnp.ones((out_channels,), jnp.float32),
        "up1_beta": jnp.zeros((out_channels,), jnp.float32),
        "up2_w": s * jax.random.normal(ks[4], (in_channels, out_channels, kernel_size, kernel_size), jnp.float32),
        "up2_b": s * jax.random.normal(ks[5], (out_channels,), jnp.float32),
        "up2_gamma": jnp.ones((out_channels,), jnp.float32),
        "up2_beta": jnp.zeros((out_channels,), jnp.float32),
    }


def decoder_block_forward(params, x, out, *, kernel_size, padding, stride):
    # torch.cat((x, out), dim=1); switch to CNHW once so the kernels'
    # [Cout, M] outputs reshape straight back to CNHW without transposes.
    xc = jnp.concatenate(
        [x.transpose(1, 0, 2, 3), out.transpose(1, 0, 2, 3)], axis=0)
    # self.down
    d = conv_bn_sigmoid(xc, params["down_w"], params["down_gamma"],
                        params["down_beta"], pad=1)
    # branch on (static) width, like the PyTorch module (CNHW last dim is W)
    if d.shape[-1] % 5 != 0:
        y = convT_bn_sigmoid(d, params["up1_w"], params["up1_gamma"],
                             params["up1_beta"], k=kernel_size, pad=padding,
                             stride=stride, output_padding=1)
    else:
        y = convT_bn_sigmoid(d, params["up2_w"], params["up2_gamma"],
                             params["up2_beta"], k=kernel_size, pad=padding,
                             stride=stride, output_padding=0)
    # TODO(synk): running-mean/var buffer updates of BatchNorm (train-mode
    # side effects) are not materialized; they do not affect forward outputs.
    return y.transpose(1, 0, 2, 3)   # CNHW -> NCHW


if __name__ == "__main__":
    in_channels, out_channels = 4, 4
    kernel_size, padding, stride = 3, 1, 2
    N, H, W = 2, 16, 16

    key = jax.random.PRNGKey(0)
    kx, ko, kp = jax.random.split(key, 3)
    x = jax.random.normal(kx, (N, in_channels, H, W), jnp.float32)
    out = jax.random.normal(ko, (N, in_channels, H, W), jnp.float32)

    params = init_decoder_block(kp, in_channels, out_channels, kernel_size)

    fwd = functools.partial(
        decoder_block_forward,
        kernel_size=kernel_size, padding=padding, stride=stride,
    )
    y = jax.jit(lambda p, a, b: fwd(p, a, b))(params, x, out)
    y = jax.block_until_ready(y)

    # W = 16, 16 % 5 != 0 -> up1 (output_padding=1): (16-1)*2 - 2 + 3 + 1 = 32
    assert y.shape == (N, out_channels, 32, 32), y.shape
    assert bool(jnp.all(jnp.isfinite(y)))
    print("KERNEL_OK")
</pallas_src>

<mosaic_0001>
module attributes {stable_mosaic.version = 11 : i64} {
  func.func @_conv_bn_sigmoid_kernel(%arg0: i32, %arg1: memref<4x72xbf16, #tpu.memory_space<vmem>>, %arg2: memref<72x512xbf16, #tpu.memory_space<vmem>>, %arg3: memref<4x1xf32, #tpu.memory_space<vmem>>, %arg4: memref<4x1xf32, #tpu.memory_space<vmem>>, %arg5: memref<4x512xf32, #tpu.memory_space<vmem>>) attributes {dimension_semantics = [#tpu.dimension_semantics<arbitrary>], iteration_bounds = array<i64: 1>, scalar_prefetch = 0 : i64, scratch_operands = 0 : i64, tpu.core_type = #tpu.core_type<tc>, window_params = [{pipeline_mode = #tpu.pipeline_mode<synchronous>, transform_indices = @transform_0, window_bounds = array<i64: 4, 72>}, {pipeline_mode = #tpu.pipeline_mode<synchronous>, transform_indices = @transform_1, window_bounds = array<i64: 72, 512>}, {pipeline_mode = #tpu.pipeline_mode<synchronous>, transform_indices = @transform_2, window_bounds = array<i64: 4, 1>}, {pipeline_mode = #tpu.pipeline_mode<synchronous>, transform_indices = @transform_3, window_bounds = array<i64: 4, 1>}, {pipeline_mode = #tpu.pipeline_mode<synchronous>, transform_indices = @transform_4, window_bounds = array<i64: 4, 512>}]} {
    %c0 = arith.constant 0 : index
    %c0_0 = arith.constant 0 : index
    %0 = vector.load %arg1[%c0, %c0_0] : memref<4x72xbf16, #tpu.memory_space<vmem>>, vector<4x72xbf16>
    %c0_1 = arith.constant 0 : index
    %c0_2 = arith.constant 0 : index
    %1 = vector.load %arg2[%c0_1, %c0_2] : memref<72x512xbf16, #tpu.memory_space<vmem>>, vector<72x512xbf16>
    %cst = arith.constant dense<0.000000e+00> : vector<4x512xf32>
    %2 = tpu.matmul %0, %1, %cst {dimension_numbers = #tpu.dot_dimension_numbers<[1], [0], [0], [1], [0, 0, 1, 1], [], []>} : vector<4x72xbf16>, vector<72x512xbf16>, vector<4x512xf32> -> vector<4x512xf32>
    %cst_3 = arith.constant dense<0.000000e+00> : vector<4xf32>
    %3 = vector.multi_reduction <add>, %2, %cst_3 [1] : vector<4x512xf32> to vector<4xf32>
    %4 = vector.shape_cast %3 : vector<4xf32> to vector<4x1xf32>
    %5 = arith.mulf %2, %2 : vector<4x512xf32>
    %cst_4 = arith.constant dense<0.000000e+00> : vector<4xf32>
    %6 = vector.multi_reduction <add>, %5, %cst_4 [1] : vector<4x512xf32> to vector<4xf32>
    %7 = vector.shape_cast %6 : vector<4xf32> to vector<4x1xf32>
    %cst_5 = arith.constant 0.001953125 : f32
    %8 = vector.broadcast %cst_5 : f32 to vector<4x1xf32>
    %9 = arith.mulf %4, %8 : vector<4x1xf32>
    %cst_6 = arith.constant 0.001953125 : f32
    %10 = vector.broadcast %cst_6 : f32 to vector<4x1xf32>
    %11 = arith.mulf %7, %10 : vector<4x1xf32>
    %12 = arith.mulf %9, %9 : vector<4x1xf32>
    %13 = arith.subf %11, %12 : vector<4x1xf32>
    %cst_7 = arith.constant 0.000000e+00 : f32
    %14 = vector.broadcast %cst_7 : f32 to vector<4x1xf32>
    %15 = arith.maximumf %13, %14 : vector<4x1xf32>
    %cst_8 = arith.constant 9.99999974E-6 : f32
    %16 = vector.broadcast %cst_8 : f32 to vector<4x1xf32>
    %17 = arith.addf %15, %16 : vector<4x1xf32>
    %18 = math.rsqrt %17 : vector<4x1xf32>
    %19 = vector.broadcast %9 : vector<4x1xf32> to vector<4x512xf32>
    %20 = arith.subf %2, %19 : vector<4x512xf32>
    %21 = vector.broadcast %18 : vector<4x1xf32> to vector<4x512xf32>
    %22 = arith.mulf %20, %21 : vector<4x512xf32>
    %c0_9 = arith.constant 0 : index
    %c0_10 = arith.constant 0 : index
    %23 = vector.load %arg3[%c0_9, %c0_10] : memref<4x1xf32, #tpu.memory_space<vmem>>, vector<4x1xf32>
    %24 = vector.broadcast %23 : vector<4x1xf32> to vector<4x512xf32>
    %25 = arith.mulf %22, %24 : vector<4x512xf32>
    %c0_11 = arith.constant 0 : index
    %c0_12 = arith.constant 0 : index
    %26 = vector.load %arg4[%c0_11, %c0_12] : memref<4x1xf32, #tpu.memory_space<vmem>>, vector<4x1xf32>
    %27 = vector.broadcast %26 : vector<4x1xf32> to vector<4x512xf32>
    %28 = arith.addf %25, %27 : vector<4x512xf32>
    %29 = arith.negf %28 : vector<4x512xf32>
    %30 = math.exp %29 : vector<4x512xf32>
    %cst_13 = arith.constant 1.000000e+00 : f32
    %31 = vector.broadcast %cst_13 : f32 to vector<4x512xf32>
    %32 = arith.addf %31, %30 : vector<4x512xf32>
    %33 = arith.divf %31, %32 : vector<4x512xf32>
    %c0_14 = arith.constant 0 : index
    %c0_15 = arith.constant 0 : index
    %34 = vector.load %arg5[%c0_14, %c0_15] : memref<4x512xf32, #tpu.memory_space<vmem>>, vector<4x512xf32>
    tpu.vector_store %arg5[%c0_14, %c0_15], %33 {strides = array<i32>} : memref<4x512xf32, #tpu.memory_space<vmem>>, vector<4x512xf32>,
    return
  }
  func.func @transform_0(%arg0: i32) -> (i32, i32) {
    %c0_i32 = arith.constant 0 : i32
    %c0_i32_0 = arith.constant 0 : i32
    %c0_i32_1 = arith.constant 0 : i32
    return %c0_i32, %c0_i32_0 : i32, i32
  }
  func.func @transform_1(%arg0: i32) -> (i32, i32) {
    %c0_i32 = arith.constant 0 : i32
    %c0_i32_0 = arith.constant 0 : i32
    %c0_i32_1 = arith.constant 0 : i32
    return %c0_i32, %c0_i32_0 : i32, i32
  }
  func.func @transform_2(%arg0: i32) -> (i32, i32) {
    %c0_i32 = arith.constant 0 : i32
    %c0_i32_0 = arith.constant 0 : i32
    %c0_i32_1 = arith.constant 0 : i32
    return %c0_i32, %c0_i32_0 : i32, i32
  }
  func.func @transform_3(%arg0: i32) -> (i32, i32) {
    %c0_i32 = arith.constant 0 : i32
    %c0_i32_0 = arith.constant 0 : i32
    %c0_i32_1 = arith.constant 0 : i32
    return %c0_i32, %c0_i32_0 : i32, i32
  }
  func.func @transform_4(%arg0: i32) -> (i32, i32) {
    %c0_i32 = arith.constant 0 : i32
    %c0_i32_0 = arith.constant 0 : i32
    %c0_i32_1 = arith.constant 0 : i32
    return %c0_i32, %c0_i32_0 : i32, i32
  }
}

module attributes {stable_mosaic.version = 11 : i64} {
  func.func @_conv_bn_sigmoid_kernel(%arg0: i32, %arg1: memref<4x36xbf16, #tpu.memory_space<vmem>>, %arg2: memref<36x2048xbf16, #tpu.memory_space<vmem>>, %arg3: memref<4x1xf32, #tpu.memory_space<vmem>>, %arg4: memref<4x1xf32, #tpu.memory_space<vmem>>, %arg5: memref<4x2048xf32, #tpu.memory_space<vmem>>) attributes {dimension_semantics = [#tpu.dimension_semantics<arbitrary>], iteration_bounds = array<i64: 1>, scalar_prefetch = 0 : i64, scratch_operands = 0 : i64, tpu.core_type = #tpu.core_type<tc>, window_params = [{pipeline_mode = #tpu.pipeline_mode<synchronous>, transform_indices = @transform_0, window_bounds = array<i64: 4, 36>}, {pipeline_mode = #tpu.pipeline_mode<synchronous>, transform_indices = @transform_1, window_bounds = array<i64: 36, 2048>}, {pipeline_mode = #tpu.pipeline_mode<synchronous>, transform_indices = @transform_2, window_bounds = array<i64: 4, 1>}, {pipeline_mode = #tpu.pipeline_mode<synchronous>, transform_indices = @transform_3, window_bounds = array<i64: 4, 1>}, {pipeline_mode = #tpu.pipeline_mode<synchronous>, transform_indices = @transform_4, window_bounds = array<i64: 4, 2048>}]} {
    %c0 = arith.constant 0 : index
    %c0_0 = arith.constant 0 : index
    %0 = vector.load %arg1[%c0, %c0_0] : memref<4x36xbf16, #tpu.memory_space<vmem>>, vector<4x36xbf16>
    %c0_1 = arith.constant 0 : index
    %c0_2 = arith.constant 0 : index
    %1 = vector.load %arg2[%c0_1, %c0_2] : memref<36x2048xbf16, #tpu.memory_space<vmem>>, vector<36x2048xbf16>
    %cst = arith.constant dense<0.000000e+00> : vector<4x2048xf32>
    %2 = tpu.matmul %0, %1, %cst {dimension_numbers = #tpu.dot_dimension_numbers<[1], [0], [0], [1], [0, 0, 1, 1], [], []>} : vector<4x36xbf16>, vector<36x2048xbf16>, vector<4x2048xf32> -> vector<4x2048xf32>
    %cst_3 = arith.constant dense<0.000000e+00> : vector<4xf32>
    %3 = vector.multi_reduction <add>, %2, %cst_3 [1] : vector<4x2048xf32> to vector<4xf32>
    %4 = vector.shape_cast %3 : vector<4xf32> to vector<4x1xf32>
    %5 = arith.mulf %2, %2 : vector<4x2048xf32>
    %cst_4 = arith.constant dense<0.000000e+00> : vector<4xf32>
    %6 = vector.multi_reduction <add>, %5, %cst_4 [1] : vector<4x2048xf32> to vector<4xf32>
    %7 = vector.shape_cast %6 : vector<4xf32> to vector<4x1xf32>
    %cst_5 = arith.constant 4.8828125E-4 : f32
    %8 = vector.broadcast %cst_5 : f32 to vector<4x1xf32>
    %9 = arith.mulf %4, %8 : vector<4x1xf32>
    %cst_6 = arith.constant 4.8828125E-4 : f32
    %10 = vector.broadcast %cst_6 : f32 to vector<4x1xf32>
    %11 = arith.mulf %7, %10 : vector<4x1xf32>
    %12 = arith.mulf %9, %9 : vector<4x1xf32>
    %13 = arith.subf %11, %12 : vector<4x1xf32>
    %cst_7 = arith.constant 0.000000e+00 : f32
    %14 = vector.broadcast %cst_7 : f32 to vector<4x1xf32>
    %15 = arith.maximumf %13, %14 : vector<4x1xf32>
    %cst_8 = arith.constant 9.99999974E-6 : f32
    %16 = vector.broadcast %cst_8 : f32 to vector<4x1xf32>
    %17 = arith.addf %15, %16 : vector<4x1xf32>
    %18 = math.rsqrt %17 : vector<4x1xf32>
    %19 = vector.broadcast %9 : vector<4x1xf32> to vector<4x2048xf32>
    %20 = arith.subf %2, %19 : vector<4x2048xf32>
    %21 = vector.broadcast %18 : vector<4x1xf32> to vector<4x2048xf32>
    %22 = arith.mulf %20, %21 : vector<4x2048xf32>
    %c0_9 = arith.constant 0 : index
    %c0_10 = arith.constant 0 : index
    %23 = vector.load %arg3[%c0_9, %c0_10] : memref<4x1xf32, #tpu.memory_space<vmem>>, vector<4x1xf32>
    %24 = vector.broadcast %23 : vector<4x1xf32> to vector<4x2048xf32>
    %25 = arith.mulf %22, %24 : vector<4x2048xf32>
    %c0_11 = arith.constant 0 : index
    %c0_12 = arith.constant 0 : index
    %26 = vector.load %arg4[%c0_11, %c0_12] : memref<4x1xf32, #tpu.memory_space<vmem>>, vector<4x1xf32>
    %27 = vector.broadcast %26 : vector<4x1xf32> to vector<4x2048xf32>
    %28 = arith.addf %25, %27 : vector<4x2048xf32>
    %29 = arith.negf %28 : vector<4x2048xf32>
    %30 = math.exp %29 : vector<4x2048xf32>
    %cst_13 = arith.constant 1.000000e+00 : f32
    %31 = vector.broadcast %cst_13 : f32 to vector<4x2048xf32>
    %32 = arith.addf %31, %30 : vector<4x2048xf32>
    %33 = arith.divf %31, %32 : vector<4x2048xf32>
    %c0_14 = arith.constant 0 : index
    %c0_15 = arith.constant 0 : index
    %34 = vector.load %arg5[%c0_14, %c0_15] : memref<4x2048xf32, #tpu.memory_space<vmem>>, vector<4x2048xf32>
    tpu.vector_store %arg5[%c0_14, %c0_15], %33 {strides = array<i32>} : memref<4x2048xf32, #tpu.memory_space<vmem>>, vector<4x2048xf32>,
    return
  }
  func.func @transform_0(%arg0: i32) -> (i32, i32) {
    %c0_i32 = arith.constant 0 : i32
    %c0_i32_0 = arith.constant 0 : i32
    %c0_i32_1 = arith.constant 0 : i32
    return %c0_i32, %c0_i32_0 : i32, i32
  }
  func.func @transform_1(%arg0: i32) -> (i32, i32) {
    %c0_i32 = arith.constant 0 : i32
    %c0_i32_0 = arith.constant 0 : i32
    %c0_i32_1 = arith.constant 0 : i32
    return %c0_i32, %c0_i32_0 : i32, i32
  }
  func.func @transform_2(%arg0: i32) -> (i32, i32) {
    %c0_i32 = arith.constant 0 : i32
    %c0_i32_0 = arith.constant 0 : i32
    %c0_i32_1 = arith.constant 0 : i32
    return %c0_i32, %c0_i32_0 : i32, i32
  }
  func.func @transform_3(%arg0: i32) -> (i32, i32) {
    %c0_i32 = arith.constant 0 : i32
    %c0_i32_0 = arith.constant 0 : i32
    %c0_i32_1 = arith.constant 0 : i32
    return %c0_i32, %c0_i32_0 : i32, i32
  }
  func.func @transform_4(%arg0: i32) -> (i32, i32) {
    %c0_i32 = arith.constant 0 : i32
    %c0_i32_0 = arith.constant 0 : i32
    %c0_i32_1 = arith.constant 0 : i32
    return %c0_i32, %c0_i32_0 : i32, i32
  }
}

</mosaic_0001>

<bundles_post_ra>
// kernel: _lambda_.2
= control target key start
LH: loop header
LB: loop body
LE: loop exit
PB: predicated region body
PF: predicated region fallthrough
CT: control target
= control target key end

     0   :  { %v398_v1 = vmov 0   ;;  %vm131_vm0 = vcmask 1043456   ;;  %vm127_vm1 = vcmask 588800   ;;  %s505_s1 = inlined_call_operand.vmem [shape: bf16[72,512], index: 1, kind: input, shape index: {}]   ;;  %s506_s0 = inlined_call_operand.vmem [shape: bf16[4,72], index: 0, kind: input, shape index: {}]   ;;  %s507_s2 = inlined_call_operand.vmem [shape: f32[4,1], index: 2, kind: input, shape index: {}]   ;;  %s508_s3 = inlined_call_operand.vmem [shape: f32[4,1], index: 3, kind: input, shape index: {}]   ;;  %s509_s4 = inlined_call_operand.vmem [shape: f32[4,512], index: 4, kind: output, shape index: {}]  }
   0x1   :  { %v352_v0 = vld [vmem:[%s505_s1 + $0x4] ss:$16 sps:$4 sm:$0xff]   ;;  %176 = vmatprep.mubr.bf16.mxu0 %v398_v1  ;;  %217 = vmatprep.mubr.bf16.mxu1 %v398_v1  ;;  %v354_v2 = vld [vmem:[%s505_s1 + $0xc] ss:$16 sps:$4 sm:$0xff]   ;;  %v356_v3 = vld [vmem:[%s505_s1] ss:$16 sps:$4 sm:$0xff]  }
   0x2   :  { %350 = vset.pattern.permute.xlu1 %v398_v1  ;;  %351 = vset.pattern.permute.xlu0 %v398_v1  ;;  %v357_v4 = vld [vmem:[%s505_s1 + $0x8] ss:$16 sps:$4 sm:$0xff]   ;;  %v358_v5 = vld [vmem:[%s505_s1 + $0x24] ss:$16 sps:$4 sm:$0xff]   ;;  %v360_v6 = vld [vmem:[%s505_s1 + $0x2c] ss:$16 sps:$4 sm:$0xff]  }
   0x3   :  { %144 = vmatprep.subr.bf16.mxu0 %v352_v0  ;;  %185 = vmatprep.subr.bf16.mxu1 %v354_v2  ;;  %v362_v7 = vld [vmem:[%s505_s1 + $0x20] ss:$16 sps:$4 sm:$0xff]   ;;  %v363_v8 = vld [vmem:[%s505_s1 + $0x28] ss:$16 sps:$4 sm:$0xff]   ;;  %v364_v9 = vld [vmem:[%s505_s1 + $0x44] ss:$16 sps:$4 sm:$0xff]  }
   0x4   :  { %145 = vmatpush1.bf16.msra.mxu0 %v356_v3  ;;  %186 = vmatpush1.bf16.msra.mxu1 %v357_v4  ;;  %v366_v10 = vld [vmem:[%s505_s1 + $0x4c] ss:$16 sps:$4 sm:$0xff]   ;;  %v368_v11 = vld [vmem:[%s505_s1 + $0x40] ss:$16 sps:$4 sm:$0xff]   ;;  %v369_v12 = vld [vmem:[%s505_s1 + $0x48] ss:$16 sps:$4 sm:$0xff]  }
   0x5   :  { %146 = vmatprep.subr.bf16.mxu0 %v358_v5  ;;  %187 = vmatprep.subr.bf16.mxu1 %v360_v6  ;;  %v370_v13 = vld [vmem:[%s505_s1 + $0x64] ss:$16 sps:$4 sm:$0xff]   ;;  %v372_v14 = vld [vmem:[%s505_s1 + $0x6c] ss:$16 sps:$4 sm:$0xff]   ;;  %v374_v17 = vld [vmem:[%s505_s1 + $0x60] ss:$16 sps:$4 sm:$0xff]  }
   0x6   :  { %v35_v15 = vld [vmem:[%s505_s1 + $0x80] sm:$0xff]  ;;  %v36_v16 = vld [vmem:[%s505_s1 + $0x88] sm:$0xff] }
   0x7   :  { %v375_v18 = vld [vmem:[%s505_s1 + $0x68] ss:$16 sps:$4 sm:$0xff]   ;;  %v338_v19 = vcombine.high %v35_v15, %v35_v15  ;;  %v340_v20 = vcombine.high %v36_v16, %v36_v16  ;;  %v337_v21 = vcombine.low %v35_v15, %v35_v15  ;;  %v339_v22 = vcombine.low %v36_v16, %v36_v16  ;;  %v18_v25 = vld [vmem:[%s506_s0] sm:$0x3] }
   0x8   :  { %147 = vmatpush1.bf16.msra.mxu0 %v362_v7  ;;  %188 = vmatpush1.bf16.msra.mxu1 %v363_v8  ;;  %v263_v26 = vld [vmem:[%s507_s2] sm:$0xf] }
   0x9   :  { %148 = vmatprep.subr.bf16.mxu0 %v364_v9  ;;  %189 = vmatprep.subr.bf16.mxu1 %v366_v10  ;;  %v133_v23 = vsel %vm131_vm0, %v337_v21, 0  ;;  %v139_v24 = vsel %vm131_vm0, %v339_v22, 0  ;;  %v273_v27 = vld [vmem:[%s508_s3] sm:$0xf] }
   0xa   :  { %266 = vperm.xlu1 %350, %v263_v26  }
   0xc   :  { %149 = vmatpush1.bf16.msra.mxu0 %v368_v11  ;;  %190 = vmatpush1.bf16.msra.mxu1 %v369_v12 }
   0xd   :  { %150 = vmatprep.subr.bf16.mxu0 %v370_v13  ;;  %191 = vmatprep.subr.bf16.mxu1 %v372_v14 }
   0xe   :  { %276 = vperm.xlu1 %350, %v273_v27  }
  0x10   :  { %151 = vmatpush1.bf16.msra.mxu0 %v374_v17  ;;  %192 = vmatpush1.bf16.msra.mxu1 %v375_v18 }
  0x11   :  { %341 = vmatprep.subr.msk.bf16.mxu0 %vm131_vm0, %v338_v19  ;;  %343 = vmatprep.subr.msk.bf16.mxu1 %vm131_vm0, %v340_v20 }
  0x14   :  { %153 = vmatpush1.bf16.msra.mxu0 %v133_v23  ;;  %194 = vmatpush1.bf16.msra.mxu1 %v139_v24 }
  0x17   :  { %342 = vmatmul.mubr.msk.bf16.vlgmr.msra.gmra.mrb[0].mxu0 %vm127_vm1, %v18_v25  ;;  %344 = vmatmul.mubr.msk.bf16.vlgmr.msra.gmra.mrb[0].mxu1 %vm127_vm1, %v18_v25 }
  0x89   :  { %v267_v62 = vpop.permute.xlu1 %266 }
  0x8d   :  { %v277_v12 = vpop.permute.xlu1 %276 }
  0xea   :  { %v178_v28 = vpop.f32.mrb[0].mxu0  ;;  %v219_v29 = vpop.f32.mrb[0].mxu1 }
  0xeb   :  { %v226_v30 = vsel %vm131_vm0, %v178_v28, 0.0  ;;  %v235_v31 = vmul.f32 %v178_v28, %v178_v28  ;;  %v237_v32 = vmul.f32 %v219_v29, %v219_v29  ;;  %v180_v33 = vpop.f32.mrb[1].mxu0  ;;  %v221_v34 = vpop.f32.mrb[1].mxu1  ;;  %v229_v39 = vsel %vm131_vm0, %v219_v29, 0.0 }
  0xec   :  { %v227_v35 = vsel %vm131_vm0, %v180_v33, 0.0  ;;  %v236_v36 = vmul.f32 %v180_v33, %v180_v33  ;;  %v182_v37 = vpop.f32.mrb[2].mxu0  ;;  %v223_v38 = vpop.f32.mrb[2].mxu1  ;;  %v238_v45 = vmul.f32 %v221_v34, %v221_v34  ;;  %v231_v49 = vsel %vm131_vm0, %v221_v34, 0.0 }
  0xed   :  { %v239_v40 = vsel %vm131_vm0, %v235_v31, 0.0  ;;  %v183_v41 = vpop.f32.mrb[3].mxu0  ;;  %v224_v42 = vpop.f32.mrb[3].mxu1  ;;  %v228_v43 = vadd.f32 %v227_v35, %v226_v30  ;;  %v242_v46 = vsel %vm131_vm0, %v237_v32, 0.0 }
  0xee   :  { %v240_v44 = vsel %vm131_vm0, %v236_v36, 0.0  ;;  %v244_v52 = vsel %vm131_vm0, %v238_v45, 0.0 }
  0xef   :  { %v230_v47 = vadd.f32 %v229_v39, %v228_v43  ;;  %v241_v48 = vadd.f32 %v240_v44, %v239_v40 }
  0xf1   :  { %v232_v50 = vadd.f32 %v231_v49, %v230_v47  ;;  %v243_v51 = vadd.f32 %v242_v46, %v241_v48 }
  0xf3   :  { %233 = vadd.xlane.f32.xlu0 %v232_v50  ;;  %v245_v53 = vadd.f32 %v244_v52, %v243_v51 }
  0xf7   :  { %246 = vadd.xlane.f32.xlu0 %v245_v53 }
 0x180   :  { %v234_v54 = vpop.xlane.xlu0 %233 }
 0x181   :  { %v248_v55 = vmul.f32 0.001953125, %v234_v54 }
 0x183   :  { %v250_v57 = vmul.f32 %v248_v55, %v248_v55  ;;  %v255_v63 = vsub.f32 %v178_v28, %v248_v55  ;;  %v256_v0 = vsub.f32 %v180_v33, %v248_v55  ;;  %v257_v1 = vsub.f32 %v219_v29, %v248_v55 }
 0x184   :  { %v247_v56 = vpop.xlane.xlu0 %246  ;;  %v258_v2 = vsub.f32 %v221_v34, %v248_v55 }
 0x185   :  { %v249_v58 = vmul.f32 0.001953125, %v247_v56 }
 0x187   :  { %v251_v59 = vsub.f32 %v249_v58, %v250_v57 }
 0x189   :  { %v252_v60 = vmax.f32 %v251_v59, 0.0 }
 0x18b   :  { %v253_v61 = vadd.f32 1e-05, %v252_v60 }
 0x18d   :  { %380 = vrsqrt.f32 %v253_v61 }
 0x197   :  { %v381_v3 = vpop.eup %380 }
 0x198   :  { %v259_v4 = vmul.f32 %v381_v3, %v255_v63  ;;  %v260_v5 = vmul.f32 %v381_v3, %v256_v0  ;;  %v261_v6 = vmul.f32 %v381_v3, %v257_v1  ;;  %v262_v7 = vmul.f32 %v381_v3, %v258_v2 }
 0x19a   :  { %v269_v8 = vmul.f32 %v267_v62, %v259_v4  ;;  %v270_v9 = vmul.f32 %v267_v62, %v260_v5  ;;  %v271_v10 = vmul.f32 %v267_v62, %v261_v6  ;;  %v272_v11 = vmul.f32 %v267_v62, %v262_v7 }
 0x19c   :  { %v279_v13 = vadd.f32 %v277_v12, %v269_v8  ;;  %v280_v14 = vadd.f32 %v277_v12, %v270_v9  ;;  %v281_v15 = vadd.f32 %v277_v12, %v271_v10  ;;  %v282_v16 = vadd.f32 %v277_v12, %v272_v11 }
 0x19e   :  { %v345_v17 = vmul.f32 -1.442695, %v279_v13  ;;  %v346_v18 = vmul.f32 -1.442695, %v280_v14  ;;  %v347_v19 = vmul.f32 -1.442695, %v281_v15 }
 0x19f   :  { %v348_v20 = vmul.f32 -1.442695, %v282_v16 }
 0x1a0   :  { %382 = vpow2.f32 %v345_v17 }
 0x1a1   :  { %384 = vpow2.f32 %v346_v18 }
 0x1a2   :  { %386 = vpow2.f32 %v347_v19 }
 0x1a3   :  { %388 = vpow2.f32 %v348_v20 }
 0x1aa   :  { %v383_v21 = vpop.eup %382 }
 0x1ab   :  { %v385_v22 = vpop.eup %384  ;;  %v295_v23 = vadd.f32 1.0, %v383_v21 }
 0x1ac   :  { %v387_v24 = vpop.eup %386  ;;  %v296_v25 = vadd.f32 1.0, %v385_v22 }
 0x1ad   :  { %v389_v26 = vpop.eup %388  ;;  %v297_v27 = vadd.f32 1.0, %v387_v24  ;;  %390 = vrcp.f32 %v295_v23 }
 0x1ae   :  { %v298_v28 = vadd.f32 1.0, %v389_v26  ;;  %392 = vrcp.f32 %v296_v25 }
 0x1af   :  { %394 = vrcp.f32 %v297_v27 }
 0x1b0   :  { %396 = vrcp.f32 %v298_v28 }
 0x1b7   :  { %v391_v29 = vpop.eup %390 }
 0x1b8   :  { %v393_v30 = vpop.eup %392 }
 0x1b9   :  { %v395_v31 = vpop.eup %394  ;;  %v311_v32 = vcombine.low %v391_v29, %v393_v30 }
 0x1ba   :  { %v397_v33 = vpop.eup %396 }
 0x1bb   :  { %v312_v34 = vcombine.low %v395_v31, %v397_v33  ;;  %315 = vst [vmem:[%s509_s4] sm:$0xff] %v311_v32 }
 0x1bd   :  { %316 = vst [vmem:[%s509_s4 + $0x8] sm:$0xff] %v312_v34 }

// kernel: _lambda_.3
= control target key start
LH: loop header
LB: loop body
LE: loop exit
PB: predicated region body
PF: predicated region fallthrough
CT: control target
= control target key end

     0   :  { %v1111_v3 = vmov 0   ;;  %vm263_vm0 = vcmask 1041408   ;;  %vm259_vm1 = vcmask 293888   ;;  %vm640_vm2 = vcmask 1043456   ;;  %s1482_s1 = inlined_call_operand.vmem [shape: bf16[36,2048], index: 1, kind: input, shape index: {}]   ;;  %s1483_s0 = inlined_call_operand.vmem [shape: bf16[4,36], index: 0, kind: input, shape index: {}]   ;;  %s1484_s2 = inlined_call_operand.vmem [shape: f32[4,1], index: 2, kind: input, shape index: {}]   ;;  %s1485_s3 = inlined_call_operand.vmem [shape: f32[4,1], index: 3, kind: input, shape index: {}]   ;;  %s1486_s4 = inlined_call_operand.vmem [shape: f32[4,2048], index: 4, kind: output, shape index: {}]  }
   0x1   :  { %v19_v0 = vld [vmem:[%s1482_s1] sm:$0xff]  ;;  %v20_v2 = vld [vmem:[%s1482_s1 + $0x8] sm:$0xff]  ;;  %344 = vmatprep.mubr.bf16.mxu0 %v1111_v3  ;;  %385 = vmatprep.mubr.bf16.mxu1 %v1111_v3  ;;  %v21_v23 = vld [vmem:[%s1482_s1 + $0x10] sm:$0xff] }
   0x2   :  { %v27_v1 = vld [vmem:[%s1482_s1 + $0x40] sm:$0xff]  ;;  %v28_v6 = vld [vmem:[%s1482_s1 + $0x48] sm:$0xff]  ;;  %1027 = vset.pattern.permute.xlu1 %v1111_v3  ;;  %1028 = vset.pattern.permute.xlu0 %v1111_v3  ;;  %v29_v24 = vld [vmem:[%s1482_s1 + $0x50] sm:$0xff] }
   0x3   :  { %v947_v4 = vcombine.high %v19_v0, %v27_v1  ;;  %v946_v5 = vcombine.low %v19_v0, %v27_v1  ;;  %v35_v7 = vld [vmem:[%s1482_s1 + $0x80] sm:$0xff]  ;;  %v949_v9 = vcombine.high %v20_v2, %v28_v6  ;;  %v948_v10 = vcombine.low %v20_v2, %v28_v6  ;;  %v36_v12 = vld [vmem:[%s1482_s1 + $0x88] sm:$0xff]  ;;  %v22_v25 = vld [vmem:[%s1482_s1 + $0x18] sm:$0xff] }
   0x4   :  { %v43_v8 = vld [vmem:[%s1482_s1 + $0xc0] sm:$0xff]  ;;  %v44_v13 = vld [vmem:[%s1482_s1 + $0xc8] sm:$0xff]  ;;  %v30_v26 = vld [vmem:[%s1482_s1 + $0x58] sm:$0xff]  ;;  %v951_v28 = vcombine.high %v21_v23, %v29_v24  ;;  %v950_v36 = vcombine.low %v21_v23, %v29_v24 }
   0x5   :  { %v963_v11 = vcombine.high %v35_v7, %v43_v8  ;;  %v51_v14 = vld [vmem:[%s1482_s1 + $0x100] sm:$0x33]  ;;  %312 = vmatprep.subr.bf16.mxu0 %v947_v4  ;;  %v965_v15 = vcombine.high %v36_v12, %v44_v13  ;;  %v52_v16 = vld [vmem:[%s1482_s1 + $0x108] sm:$0x33]  ;;  %353 = vmatprep.subr.bf16.mxu1 %v949_v9  ;;  %v962_v17 = vcombine.low %v35_v7, %v43_v8  ;;  %v37_v31 = vld [vmem:[%s1482_s1 + $0x90] sm:$0xff] }
   0x6   :  { %313 = vmatpush1.bf16.msra.mxu0 %v946_v5  ;;  %354 = vmatpush1.bf16.msra.mxu1 %v948_v10  ;;  %v964_v18 = vcombine.low %v36_v12, %v44_v13  ;;  %v979_v19 = vcombine.high %v51_v14, %v51_v14  ;;  %v978_v20 = vcombine.low %v51_v14, %v51_v14  ;;  %v45_v32 = vld [vmem:[%s1482_s1 + $0xd0] sm:$0xff]  ;;  %v38_v33 = vld [vmem:[%s1482_s1 + $0x98] sm:$0xff]  ;;  %v1202_v35 = vld [vmem:[%s1483_s0] sm:$0x3] }
   0x7   :  { %314 = vmatprep.subr.bf16.mxu0 %v963_v11  ;;  %355 = vmatprep.subr.bf16.mxu1 %v965_v15  ;;  %v981_v21 = vcombine.high %v52_v16, %v52_v16  ;;  %v980_v22 = vcombine.low %v52_v16, %v52_v16  ;;  %v953_v30 = vcombine.high %v22_v25, %v30_v26  ;;  %v46_v34 = vld [vmem:[%s1482_s1 + $0xd8] sm:$0xff]  ;;  %v53_v40 = vld [vmem:[%s1482_s1 + $0x110] sm:$0x33]  ;;  %v23_v48 = vld [vmem:[%s1482_s1 + $0x20] sm:$0xff] }
   0x8   :  { %v265_v27 = vsel %vm263_vm0, %v978_v20, 0  ;;  %v952_v37 = vcombine.low %v22_v25, %v30_v26  ;;  %v967_v38 = vcombine.high %v37_v31, %v45_v32  ;;  %v969_v39 = vcombine.high %v38_v33, %v46_v34  ;;  %v54_v41 = vld [vmem:[%s1482_s1 + $0x118] sm:$0x33]  ;;  %v31_v49 = vld [vmem:[%s1482_s1 + $0x60] sm:$0xff]  ;;  %v24_v50 = vld [vmem:[%s1482_s1 + $0x28] sm:$0xff] }
   0x9   :  { %v271_v29 = vsel %vm263_vm0, %v980_v22, 0  ;;  %v966_v42 = vcombine.low %v37_v31, %v45_v32  ;;  %v968_v43 = vcombine.low %v38_v33, %v46_v34  ;;  %v983_v44 = vcombine.high %v53_v40, %v53_v40  ;;  %v32_v51 = vld [vmem:[%s1482_s1 + $0x68] sm:$0xff]  ;;  %v39_v56 = vld [vmem:[%s1482_s1 + $0xa0] sm:$0xff]  ;;  %v25_v9 = vld [vmem:[%s1482_s1 + $0x30] sm:$0xff] }
   0xa   :  { %315 = vmatpush1.bf16.msra.mxu0 %v962_v17  ;;  %356 = vmatpush1.bf16.msra.mxu1 %v964_v18  ;;  %v982_v45 = vcombine.low %v53_v40, %v53_v40  ;;  %v985_v46 = vcombine.high %v54_v41, %v54_v41  ;;  %v984_v47 = vcombine.low %v54_v41, %v54_v41  ;;  %v47_v57 = vld [vmem:[%s1482_s1 + $0xe0] sm:$0xff]  ;;  %v40_v58 = vld [vmem:[%s1482_s1 + $0xa8] sm:$0xff]  ;;  %v33_v10 = vld [vmem:[%s1482_s1 + $0x70] sm:$0xff] }
   0xb   :  { %994 = vmatprep.subr.msk.bf16.mxu0 %vm263_vm0, %v979_v19  ;;  %996 = vmatprep.subr.msk.bf16.mxu1 %vm263_vm0, %v981_v21  ;;  %v955_v53 = vcombine.high %v23_v48, %v31_v49  ;;  %v957_v55 = vcombine.high %v24_v50, %v32_v51  ;;  %v48_v59 = vld [vmem:[%s1482_s1 + $0xe8] sm:$0xff]  ;;  %v954_v60 = vcombine.low %v23_v48, %v31_v49  ;;  %v55_v0 = vld [vmem:[%s1482_s1 + $0x120] sm:$0x33]  ;;  %v26_v11 = vld [vmem:[%s1482_s1 + $0x38] sm:$0xff] }
   0xc   :  { %v277_v52 = vsel %vm263_vm0, %v982_v45, 0  ;;  %v283_v54 = vsel %vm263_vm0, %v984_v47, 0  ;;  %v956_v61 = vcombine.low %v24_v50, %v32_v51  ;;  %v971_v62 = vcombine.high %v39_v56, %v47_v57  ;;  %v56_v1 = vld [vmem:[%s1482_s1 + $0x128] sm:$0x33]  ;;  %v34_v12 = vld [vmem:[%s1482_s1 + $0x78] sm:$0xff]  ;;  %v41_v17 = vld [vmem:[%s1482_s1 + $0xb0] sm:$0xff] }
   0xd   :  { %v973_v63 = vcombine.high %v40_v58, %v48_v59  ;;  %v970_v2 = vcombine.low %v39_v56, %v47_v57  ;;  %v972_v4 = vcombine.low %v40_v58, %v48_v59  ;;  %v987_v5 = vcombine.high %v55_v0, %v55_v0  ;;  %v49_v18 = vld [vmem:[%s1482_s1 + $0xf0] sm:$0xff]  ;;  %v42_v19 = vld [vmem:[%s1482_s1 + $0xb8] sm:$0xff] }
   0xe   :  { %317 = vmatpush1.bf16.msra.mxu0 %v265_v27  ;;  %358 = vmatpush1.bf16.msra.mxu1 %v271_v29  ;;  %v986_v6 = vcombine.low %v55_v0, %v55_v0  ;;  %v989_v7 = vcombine.high %v56_v1, %v56_v1  ;;  %v988_v8 = vcombine.low %v56_v1, %v56_v1  ;;  %v50_v20 = vld [vmem:[%s1482_s1 + $0xf8] sm:$0xff]  ;;  %v57_v25 = vld [vmem:[%s1482_s1 + $0x130] sm:$0x33] }
   0xf   :  { %394 = vmatprep.subr.bf16.mxu0 %v951_v28  ;;  %435 = vmatprep.subr.bf16.mxu1 %v953_v30  ;;  %v959_v14 = vcombine.high %v25_v9, %v33_v10  ;;  %v961_v16 = vcombine.high %v26_v11, %v34_v12  ;;  %v958_v21 = vcombine.low %v25_v9, %v33_v10  ;;  %v58_v26 = vld [vmem:[%s1482_s1 + $0x138] sm:$0x33] }
  0x10   :  { %v289_v13 = vsel %vm263_vm0, %v986_v6, 0  ;;  %v295_v15 = vsel %vm263_vm0, %v988_v8, 0  ;;  %v960_v22 = vcombine.low %v26_v11, %v34_v12  ;;  %v975_v23 = vcombine.high %v41_v17, %v49_v18 }
  0x11   :  { %995 = vmatmul.mubr.msk.bf16.vlgmr.msra.gmra.mrb[0].mxu0 %vm259_vm1, %v1202_v35  ;;  %997 = vmatmul.mubr.msk.bf16.vlgmr.msra.gmra.mrb[0].mxu1 %vm259_vm1, %v1202_v35  ;;  %v977_v24 = vcombine.high %v42_v19, %v50_v20  ;;  %v974_v27 = vcombine.low %v41_v17, %v49_v18  ;;  %v976_v28 = vcombine.low %v42_v19, %v50_v20 }
  0x12   :  { %395 = vmatpush1.bf16.msra.mxu0 %v950_v36  ;;  %436 = vmatpush1.bf16.msra.mxu1 %v952_v37  ;;  %v991_v29 = vcombine.high %v57_v25, %v57_v25  ;;  %v990_v30 = vcombine.low %v57_v25, %v57_v25  ;;  %v993_v31 = vcombine.high %v58_v26, %v58_v26  ;;  %v784_v36 = vld [vmem:[%s1485_s3] sm:$0xf] }
  0x13   :  { %396 = vmatprep.subr.bf16.mxu0 %v967_v38  ;;  %437 = vmatprep.subr.bf16.mxu1 %v969_v39  ;;  %v992_v32 = vcombine.low %v58_v26, %v58_v26 }
  0x14   :  { %426 = vmatprep.mubr.bf16.mxu0 %v1111_v3  ;;  %467 = vmatprep.mubr.bf16.mxu1 %v1111_v3  ;;  %v301_v33 = vsel %vm263_vm0, %v990_v30, 0 }
  0x15   :  { %v307_v34 = vsel %vm263_vm0, %v992_v32, 0 }
  0x16   :  { %397 = vmatpush1.bf16.msra.mxu0 %v966_v42  ;;  %438 = vmatpush1.bf16.msra.mxu1 %v968_v43 }
  0x17   :  { %998 = vmatprep.subr.msk.bf16.mxu0 %vm263_vm0, %v983_v44  ;;  %1000 = vmatprep.subr.msk.bf16.mxu1 %vm263_vm0, %v985_v46 }
  0x1a   :  { %399 = vmatpush1.bf16.msra.mxu0 %v277_v52  ;;  %440 = vmatpush1.bf16.msra.mxu1 %v283_v54 }
  0x1b   :  { %476 = vmatprep.subr.bf16.mxu0 %v955_v53  ;;  %517 = vmatprep.subr.bf16.mxu1 %v957_v55 }
  0x1d   :  { %999 = vmatmul.mubr.msk.bf16.vlgmr.msra.gmra.mrb[4].mxu0 %vm259_vm1, %v1202_v35  ;;  %1001 = vmatmul.mubr.msk.bf16.vlgmr.msra.gmra.mrb[4].mxu1 %vm259_vm1, %v1202_v35 }
  0x1e   :  { %477 = vmatpush1.bf16.msra.mxu0 %v954_v60  ;;  %518 = vmatpush1.bf16.msra.mxu1 %v956_v61 }
  0x1f   :  { %478 = vmatprep.subr.bf16.mxu0 %v971_v62  ;;  %519 = vmatprep.subr.bf16.mxu1 %v973_v63 }
  0x20   :  { %508 = vmatprep.mubr.bf16.mxu0 %v1111_v3  ;;  %549 = vmatprep.mubr.bf16.mxu1 %v1111_v3 }
  0x22   :  { %479 = vmatpush1.bf16.msra.mxu0 %v970_v2  ;;  %520 = vmatpush1.bf16.msra.mxu1 %v972_v4 }
  0x23   :  { %1002 = vmatprep.subr.msk.bf16.mxu0 %vm263_vm0, %v987_v5  ;;  %1004 = vmatprep.subr.msk.bf16.mxu1 %vm263_vm0, %v989_v7 }
  0x26   :  { %481 = vmatpush1.bf16.msra.mxu0 %v289_v13  ;;  %522 = vmatpush1.bf16.msra.mxu1 %v295_v15 }
  0x27   :  { %558 = vmatprep.subr.bf16.mxu0 %v959_v14  ;;  %599 = vmatprep.subr.bf16.mxu1 %v961_v16 }
  0x29   :  { %1003 = vmatmul.mubr.msk.bf16.vlgmr.msra.gmra.mrb[8].mxu0 %vm259_vm1, %v1202_v35  ;;  %1005 = vmatmul.mubr.msk.bf16.vlgmr.msra.gmra.mrb[8].mxu1 %vm259_vm1, %v1202_v35 }
  0x2a   :  { %559 = vmatpush1.bf16.msra.mxu0 %v958_v21  ;;  %600 = vmatpush1.bf16.msra.mxu1 %v960_v22 }
  0x2b   :  { %560 = vmatprep.subr.bf16.mxu0 %v975_v23  ;;  %601 = vmatprep.subr.bf16.mxu1 %v977_v24 }
  0x2c   :  { %590 = vmatprep.mubr.bf16.mxu0 %v1111_v3  ;;  %631 = vmatprep.mubr.bf16.mxu1 %v1111_v3  ;;  %v762_v3 = vld [vmem:[%s1484_s2] sm:$0xf] }
  0x2d   :  { %765 = vperm.xlu1 %1027, %v762_v3  }
  0x2e   :  { %561 = vmatpush1.bf16.msra.mxu0 %v974_v27  ;;  %602 = vmatpush1.bf16.msra.mxu1 %v976_v28 }
  0x2f   :  { %1006 = vmatprep.subr.msk.bf16.mxu0 %vm263_vm0, %v991_v29  ;;  %1008 = vmatprep.subr.msk.bf16.mxu1 %vm263_vm0, %v993_v31 }
  0x31   :  { %787 = vperm.xlu1 %1027, %v784_v36  }
  0x32   :  { %563 = vmatpush1.bf16.msra.mxu0 %v301_v33  ;;  %604 = vmatpush1.bf16.msra.mxu1 %v307_v34 }
  0x35   :  { %1007 = vmatmul.mubr.msk.bf16.vlgmr.msra.gmra.mrb[12].mxu0 %vm259_vm1, %v1202_v35  ;;  %1009 = vmatmul.mubr.msk.bf16.vlgmr.msra.gmra.mrb[12].mxu1 %vm259_vm1, %v1202_v35 }
  0xe4   :  { %v1310_v37 = vpop.f32.mrb[0].mxu0  ;;  %v1318_v40 = vpop.f32.mrb[0].mxu1 }
  0xe5   :  { %v641_v38 = vsel %vm640_vm2, %v1310_v37, 0.0  ;;  %v674_v39 = vmul.f32 %v1310_v37, %v1310_v37  ;;  %v1316_v35 = vpop.f32.mrb[1].mxu0  ;;  %v644_v44 = vsel %vm640_vm2, %v1318_v40, 0.0  ;;  %v676_v45 = vmul.f32 %v1318_v40, %v1318_v40  ;;  %v1328_v46 = vpop.f32.mrb[1].mxu1 }
  0xe6   :  { %v642_v41 = vsel %vm640_vm2, %v1316_v35, 0.0  ;;  %v675_v42 = vmul.f32 %v1316_v35, %v1316_v35  ;;  %v350_v43 = vpop.f32.mrb[2].mxu0  ;;  %v677_v50 = vmul.f32 %v1328_v46, %v1328_v46  ;;  %v391_v51 = vpop.f32.mrb[2].mxu1  ;;  %v646_v54 = vsel %vm640_vm2, %v1328_v46, 0.0 }
  0xe7   :  { %v690_v47 = vsel %vm640_vm2, %v674_v39, 0.0  ;;  %v643_v48 = vadd.f32 %v642_v41, %v641_v38  ;;  %v351_v49 = vpop.f32.mrb[3].mxu0  ;;  %v693_v53 = vsel %vm640_vm2, %v676_v45, 0.0  ;;  %v392_v55 = vpop.f32.mrb[3].mxu1 }
  0xe8   :  { %v691_v52 = vsel %vm640_vm2, %v675_v42, 0.0  ;;  %v695_v58 = vsel %vm640_vm2, %v677_v50, 0.0 }
  0xe9   :  { %v692_v56 = vadd.f32 %v691_v52, %v690_v47  ;;  %v645_v57 = vadd.f32 %v644_v44, %v643_v48 }
  0xeb   :  { %v694_v59 = vadd.f32 %v693_v53, %v692_v56  ;;  %v647_v60 = vadd.f32 %v646_v54, %v645_v57 }
  0xed   :  { %v696_v61 = vadd.f32 %v695_v58, %v694_v59 }
  0xf0   :  { %v1338_v62 = vpop.f32.mrb[4].mxu0  ;;  %v1346_v2 = vpop.f32.mrb[4].mxu1 }
  0xf1   :  { %v648_v63 = vsel %vm640_vm2, %v1338_v62, 0.0  ;;  %v678_v0 = vmul.f32 %v1338_v62, %v1338_v62  ;;  %v1344_v1 = vpop.f32.mrb[5].mxu0  ;;  %v1352_v8 = vpop.f32.mrb[5].mxu1  ;;  %v652_v10 = vsel %vm640_vm2, %v1346_v2, 0.0  ;;  %v680_v11 = vmul.f32 %v1346_v2, %v1346_v2 }
  0xf2   :  { %v649_v4 = vadd.f32 %v648_v63, %v647_v60  ;;  %v650_v5 = vsel %vm640_vm2, %v1344_v1, 0.0  ;;  %v679_v6 = vmul.f32 %v1344_v1, %v1344_v1  ;;  %v432_v7 = vpop.f32.mrb[6].mxu0  ;;  %v681_v13 = vmul.f32 %v1352_v8, %v1352_v8  ;;  %v473_v14 = vpop.f32.mrb[6].mxu1 }
  0xf3   :  { %v697_v9 = vsel %vm640_vm2, %v678_v0, 0.0  ;;  %v433_v12 = vpop.f32.mrb[7].mxu0  ;;  %v474_v18 = vpop.f32.mrb[7].mxu1  ;;  %v701_v19 = vsel %vm640_vm2, %v680_v11, 0.0  ;;  %v654_v20 = vsel %vm640_vm2, %v1352_v8, 0.0 }
  0xf4   :  { %v698_v15 = vadd.f32 %v697_v9, %v696_v61  ;;  %v651_v16 = vadd.f32 %v650_v5, %v649_v4  ;;  %v699_v17 = vsel %vm640_vm2, %v679_v6, 0.0  ;;  %v703_v23 = vsel %vm640_vm2, %v681_v13, 0.0 }
  0xf6   :  { %v700_v21 = vadd.f32 %v699_v17, %v698_v15  ;;  %v653_v22 = vadd.f32 %v652_v10, %v651_v16 }
  0xf8   :  { %v702_v24 = vadd.f32 %v701_v19, %v700_v21  ;;  %v655_v25 = vadd.f32 %v654_v20, %v653_v22 }
  0xfa   :  { %v704_v26 = vadd.f32 %v703_v23, %v702_v24 }
  0xfc   :  { %v1366_v27 = vpop.f32.mrb[8].mxu0  ;;  %v1374_v31 = vpop.f32.mrb[8].mxu1 }
  0xfd   :  { %v656_v28 = vsel %vm640_vm2, %v1366_v27, 0.0  ;;  %v682_v29 = vmul.f32 %v1366_v27, %v1366_v27  ;;  %v1372_v30 = vpop.f32.mrb[9].mxu0  ;;  %v1380_v36 = vpop.f32.mrb[9].mxu1  ;;  %v660_v39 = vsel %vm640_vm2, %v1374_v31, 0.0  ;;  %v684_v41 = vmul.f32 %v1374_v31, %v1374_v31 }
  0xfe   :  { %v657_v32 = vadd.f32 %v656_v28, %v655_v25  ;;  %v658_v33 = vsel %vm640_vm2, %v1372_v30, 0.0  ;;  %v683_v34 = vmul.f32 %v1372_v30, %v1372_v30  ;;  %v514_v3 = vpop.f32.mrb[10].mxu0  ;;  %v685_v43 = vmul.f32 %v1380_v36, %v1380_v36  ;;  %v555_v44 = vpop.f32.mrb[10].mxu1 }
  0xff   :  { %v705_v38 = vsel %vm640_vm2, %v682_v29, 0.0  ;;  %v515_v42 = vpop.f32.mrb[11].mxu0  ;;  %v556_v49 = vpop.f32.mrb[11].mxu1  ;;  %v709_v50 = vsel %vm640_vm2, %v684_v41, 0.0  ;;  %v662_v51 = vsel %vm640_vm2, %v1380_v36, 0.0 }
 0x100   :  { %v706_v45 = vadd.f32 %v705_v38, %v704_v26  ;;  %v659_v47 = vadd.f32 %v658_v33, %v657_v32  ;;  %v707_v48 = vsel %vm640_vm2, %v683_v34, 0.0  ;;  %v711_v54 = vsel %vm640_vm2, %v685_v43, 0.0 }
 0x102   :  { %v708_v52 = vadd.f32 %v707_v48, %v706_v45  ;;  %v661_v53 = vadd.f32 %v660_v39, %v659_v47 }
 0x104   :  { %v710_v55 = vadd.f32 %v709_v50, %v708_v52  ;;  %v663_v56 = vadd.f32 %v662_v51, %v661_v53  ;;  %v766_v51 = vpop.permute.xlu1 %765 }
 0x106   :  { %v712_v57 = vadd.f32 %v711_v54, %v710_v55 }
 0x108   :  { %v1394_v58 = vpop.f32.mrb[12].mxu0  ;;  %v1402_v63 = vpop.f32.mrb[12].mxu1 }
 0x109   :  { %v664_v59 = vsel %vm640_vm2, %v1394_v58, 0.0  ;;  %v686_v60 = vmul.f32 %v1394_v58, %v1394_v58  ;;  %v1400_v61 = vpop.f32.mrb[13].mxu0  ;;  %v688_v6 = vmul.f32 %v1402_v63, %v1402_v63  ;;  %v1410_v9 = vpop.f32.mrb[13].mxu1  ;;  %v668_v13 = vsel %vm640_vm2, %v1402_v63, 0.0 }
 0x10a   :  { %v665_v0 = vadd.f32 %v664_v59, %v663_v56  ;;  %v666_v4 = vsel %vm640_vm2, %v1400_v61, 0.0  ;;  %v687_v5 = vmul.f32 %v1400_v61, %v1400_v61  ;;  %v596_v7 = vpop.f32.mrb[14].mxu0  ;;  %v637_v12 = vpop.f32.mrb[14].mxu1  ;;  %v689_v18 = vmul.f32 %v1410_v9, %v1410_v9 }
 0x10b   :  { %v713_v10 = vsel %vm640_vm2, %v686_v60, 0.0  ;;  %v597_v11 = vpop.f32.mrb[15].mxu0  ;;  %v638_v16 = vpop.f32.mrb[15].mxu1  ;;  %v717_v19 = vsel %vm640_vm2, %v688_v6, 0.0  ;;  %v670_v22 = vsel %vm640_vm2, %v1410_v9, 0.0 }
 0x10c   :  { %v714_v14 = vadd.f32 %v713_v10, %v712_v57  ;;  %v715_v15 = vsel %vm640_vm2, %v687_v5, 0.0  ;;  %v667_v17 = vadd.f32 %v666_v4, %v665_v0  ;;  %v719_v25 = vsel %vm640_vm2, %v689_v18, 0.0  ;;  %v788_v5 = vpop.permute.xlu1 %787 }
 0x10e   :  { %v669_v20 = vadd.f32 %v668_v13, %v667_v17  ;;  %v716_v21 = vadd.f32 %v715_v15, %v714_v14 }
 0x110   :  { %v671_v23 = vadd.f32 %v670_v22, %v669_v20  ;;  %v718_v24 = vadd.f32 %v717_v19, %v716_v21 }
 0x112   :  { %672 = vadd.xlane.f32.xlu0 %v671_v23  ;;  %v720_v26 = vadd.f32 %v719_v25, %v718_v24 }
 0x116   :  { %721 = vadd.xlane.f32.xlu0 %v720_v26 }
 0x19f   :  { %v673_v28 = vpop.xlane.xlu0 %672 }
 0x1a0   :  { %v1422_v29 = vmul.f32 0.00048828125, %v673_v28 }
 0x1a2   :  { %v725_v33 = vmul.f32 %v1422_v29, %v1422_v29  ;;  %v730_v41 = vsub.f32 %v1310_v37, %v1422_v29  ;;  %v731_v42 = vsub.f32 %v1316_v35, %v1422_v29  ;;  %v732_v43 = vsub.f32 %v1318_v40, %v1422_v29 }
 0x1a3   :  { %v722_v32 = vpop.xlane.xlu0 %721  ;;  %v733_v45 = vsub.f32 %v1328_v46, %v1422_v29  ;;  %v734_v47 = vsub.f32 %v1338_v62, %v1422_v29  ;;  %v735_v37 = vsub.f32 %v1344_v1, %v1422_v29  ;;  %v736_v35 = vsub.f32 %v1346_v2, %v1422_v29 }
 0x1a4   :  { %v724_v34 = vmul.f32 0.00048828125, %v722_v32  ;;  %v737_v40 = vsub.f32 %v1352_v8, %v1422_v29  ;;  %v738_v46 = vsub.f32 %v1366_v27, %v1422_v29  ;;  %v739_v62 = vsub.f32 %v1372_v30, %v1422_v29 }
 0x1a5   :  { %v740_v1 = vsub.f32 %v1374_v31, %v1422_v29  ;;  %v741_v2 = vsub.f32 %v1380_v36, %v1422_v29  ;;  %v742_v8 = vsub.f32 %v1394_v58, %v1422_v29  ;;  %v743_v27 = vsub.f32 %v1400_v61, %v1422_v29 }
 0x1a6   :  { %v726_v3 = vsub.f32 %v724_v34, %v725_v33  ;;  %v744_v6 = vsub.f32 %v1402_v63, %v1422_v29  ;;  %v745_v14 = vsub.f32 %v1410_v9, %v1422_v29 }
 0x1a8   :  { %v727_v38 = vmax.f32 %v726_v3, 0.0 }
 0x1aa   :  { %v728_v39 = vadd.f32 1e-05, %v727_v38 }
 0x1ac   :  { %1045 = vrsqrt.f32 %v728_v39 }
 0x1b6   :  { %v1046_v44 = vpop.eup %1045 }
 0x1b7   :  { %v746_v48 = vmul.f32 %v1046_v44, %v730_v41  ;;  %v747_v49 = vmul.f32 %v1046_v44, %v731_v42  ;;  %v748_v50 = vmul.f32 %v1046_v44, %v732_v43  ;;  %v749_v52 = vmul.f32 %v1046_v44, %v733_v45 }
 0x1b8   :  { %v750_v53 = vmul.f32 %v1046_v44, %v734_v47  ;;  %v751_v54 = vmul.f32 %v1046_v44, %v735_v37  ;;  %v752_v55 = vmul.f32 %v1046_v44, %v736_v35  ;;  %v753_v60 = vmul.f32 %v1046_v44, %v737_v40 }
 0x1b9   :  { %v768_v56 = vmul.f32 %v766_v51, %v746_v48  ;;  %v769_v57 = vmul.f32 %v766_v51, %v747_v49  ;;  %v770_v59 = vmul.f32 %v766_v51, %v748_v50  ;;  %v771_v0 = vmul.f32 %v766_v51, %v749_v52 }
 0x1ba   :  { %v754_v30 = vmul.f32 %v1046_v44, %v738_v46  ;;  %v772_v4 = vmul.f32 %v766_v51, %v750_v53  ;;  %v755_v7 = vmul.f32 %v1046_v44, %v739_v62  ;;  %v756_v10 = vmul.f32 %v1046_v44, %v740_v1 }
 0x1bb   :  { %v773_v31 = vmul.f32 %v766_v51, %v751_v54  ;;  %v774_v11 = vmul.f32 %v766_v51, %v752_v55  ;;  %v790_v12 = vadd.f32 %v788_v5, %v768_v56  ;;  %v791_v36 = vadd.f32 %v788_v5, %v769_v57 }
 0x1bc   :  { %v792_v13 = vadd.f32 %v788_v5, %v770_v59  ;;  %v757_v58 = vmul.f32 %v1046_v44, %v741_v2  ;;  %v775_v15 = vmul.f32 %v766_v51, %v753_v60  ;;  %v793_v16 = vadd.f32 %v788_v5, %v771_v0 }
 0x1bd   :  { %v758_v61 = vmul.f32 %v1046_v44, %v742_v8  ;;  %v759_v17 = vmul.f32 %v1046_v44, %v743_v27  ;;  %v776_v18 = vmul.f32 %v766_v51, %v754_v30  ;;  %v794_v19 = vadd.f32 %v788_v5, %v772_v4 }
 0x1be   :  { %v760_v20 = vmul.f32 %v1046_v44, %v744_v6  ;;  %v777_v21 = vmul.f32 %v766_v51, %v755_v7  ;;  %v778_v63 = vmul.f32 %v766_v51, %v756_v10  ;;  %v795_v22 = vadd.f32 %v788_v5, %v773_v31 }
 0x1bf   :  { %v796_v23 = vadd.f32 %v788_v5, %v774_v11  ;;  %v1010_v24 = vmul.f32 -1.442695, %v790_v12  ;;  %v1011_v25 = vmul.f32 -1.442695, %v791_v36  ;;  %v1012_v26 = vmul.f32 -1.442695, %v792_v13 }
 0x1c0   :  { %v761_v28 = vmul.f32 %v1046_v44, %v745_v14  ;;  %v779_v32 = vmul.f32 %v766_v51, %v757_v58  ;;  %v797_v33 = vadd.f32 %v788_v5, %v775_v15  ;;  %v1013_v34 = vmul.f32 -1.442695, %v793_v16 }
 0x1c1   :  { %v780_v9 = vmul.f32 %v766_v51, %v758_v61  ;;  %v798_v29 = vadd.f32 %v788_v5, %v776_v18  ;;  %1047 = vpow2.f32 %v1010_v24  ;;  %v1014_v3 = vmul.f32 -1.442695, %v794_v19 }
 0x1c2   :  { %v781_v38 = vmul.f32 %v766_v51, %v759_v17  ;;  %v799_v39 = vadd.f32 %v788_v5, %v777_v21  ;;  %1049 = vpow2.f32 %v1011_v25  ;;  %v1015_v41 = vmul.f32 -1.442695, %v795_v22 }
 0x1c3   :  { %v782_v42 = vmul.f32 %v766_v51, %v760_v20  ;;  %v800_v43 = vadd.f32 %v788_v5, %v778_v63  ;;  %1051 = vpow2.f32 %v1012_v26  ;;  %v1016_v45 = vmul.f32 -1.442695, %v796_v23 }
 0x1c4   :  { %v783_v47 = vmul.f32 %v766_v51, %v761_v28  ;;  %v801_v48 = vadd.f32 %v788_v5, %v779_v32  ;;  %1053 = vpow2.f32 %v1013_v34  ;;  %v1017_v49 = vmul.f32 -1.442695, %v797_v33 }
 0x1c5   :  { %v802_v44 = vadd.f32 %v788_v5, %v780_v9  ;;  %1055 = vpow2.f32 %v1014_v3  ;;  %v1018_v50 = vmul.f32 -1.442695, %v798_v29  ;;  %v803_v37 = vadd.f32 %v788_v5, %v781_v38 }
 0x1c6   :  { %1057 = vpow2.f32 %v1015_v41  ;;  %v1019_v52 = vmul.f32 -1.442695, %v799_v39  ;;  %v804_v35 = vadd.f32 %v788_v5, %v782_v42  ;;  %v1020_v53 = vmul.f32 -1.442695, %v800_v43 }
 0x1c7   :  { %1059 = vpow2.f32 %v1016_v45  ;;  %v805_v40 = vadd.f32 %v788_v5, %v783_v47  ;;  %v1021_v46 = vmul.f32 -1.442695, %v801_v48  ;;  %v1022_v62 = vmul.f32 -1.442695, %v802_v44 }
 0x1c8   :  { %1061 = vpow2.f32 %v1017_v49  ;;  %v1023_v54 = vmul.f32 -1.442695, %v803_v37  ;;  %v1024_v55 = vmul.f32 -1.442695, %v804_v35 }
 0x1c9   :  { %1063 = vpow2.f32 %v1018_v50  ;;  %v1025_v57 = vmul.f32 -1.442695, %v805_v40 }
 0x1ca   :  { %1065 = vpow2.f32 %v1019_v52 }
 0x1cb   :  { %v1048_v51 = vpop.eup %1047  ;;  %1067 = vpow2.f32 %v1020_v53 }
 0x1cc   :  { %v1050_v56 = vpop.eup %1049  ;;  %1069 = vpow2.f32 %v1021_v46  ;;  %v854_v1 = vadd.f32 1.0, %v1048_v51 }
 0x1cd   :  { %v1052_v59 = vpop.eup %1051  ;;  %1071 = vpow2.f32 %v1022_v62  ;;  %v855_v60 = vadd.f32 1.0, %v1050_v56 }
 0x1ce   :  { %v1054_v2 = vpop.eup %1053  ;;  %1073 = vpow2.f32 %v1023_v54  ;;  %v856_v8 = vadd.f32 1.0, %v1052_v59 }
 0x1cf   :  { %v1056_v0 = vpop.eup %1055  ;;  %1075 = vpow2.f32 %v1024_v55  ;;  %v857_v30 = vadd.f32 1.0, %v1054_v2 }
 0x1d0   :  { %v1058_v27 = vpop.eup %1057  ;;  %1077 = vpow2.f32 %v1025_v57  ;;  %v858_v5 = vadd.f32 1.0, %v1056_v0 }
 0x1d1   :  { %v1060_v4 = vpop.eup %1059  ;;  %1079 = vrcp.f32 %v854_v1  ;;  %v859_v7 = vadd.f32 1.0, %v1058_v27 }
 0x1d2   :  { %v1062_v6 = vpop.eup %1061  ;;  %1081 = vrcp.f32 %v855_v60  ;;  %v860_v31 = vadd.f32 1.0, %v1060_v4 }
 0x1d3   :  { %v1064_v10 = vpop.eup %1063  ;;  %1083 = vrcp.f32 %v856_v8  ;;  %v861_v12 = vadd.f32 1.0, %v1062_v6 }
 0x1d4   :  { %v1066_v11 = vpop.eup %1065  ;;  %1085 = vrcp.f32 %v857_v30  ;;  %v862_v13 = vadd.f32 1.0, %v1064_v10 }
 0x1d5   :  { %v1068_v36 = vpop.eup %1067  ;;  %1087 = vrcp.f32 %v858_v5  ;;  %v863_v58 = vadd.f32 1.0, %v1066_v11 }
 0x1d6   :  { %v1070_v14 = vpop.eup %1069  ;;  %1089 = vrcp.f32 %v859_v7  ;;  %v864_v16 = vadd.f32 1.0, %v1068_v36 }
 0x1d7   :  { %v1072_v15 = vpop.eup %1071  ;;  %1091 = vrcp.f32 %v860_v31  ;;  %v865_v17 = vadd.f32 1.0, %v1070_v14 }
 0x1d8   :  { %v1074_v61 = vpop.eup %1073  ;;  %1093 = vrcp.f32 %v861_v12  ;;  %v866_v19 = vadd.f32 1.0, %v1072_v15 }
 0x1d9   :  { %v1076_v18 = vpop.eup %1075  ;;  %1095 = vrcp.f32 %v862_v13  ;;  %v867_v21 = vadd.f32 1.0, %v1074_v61 }
 0x1da   :  { %v1078_v20 = vpop.eup %1077  ;;  %1097 = vrcp.f32 %v863_v58  ;;  %v868_v22 = vadd.f32 1.0, %v1076_v18 }
 0x1db   :  { %v1080_v63 = vpop.eup %1079  ;;  %1099 = vrcp.f32 %v864_v16  ;;  %v869_v24 = vadd.f32 1.0, %v1078_v20 }
 0x1dc   :  { %v1082_v23 = vpop.eup %1081  ;;  %1101 = vrcp.f32 %v865_v17 }
 0x1dd   :  { %v1084_v25 = vpop.eup %1083  ;;  %1103 = vrcp.f32 %v866_v19  ;;  %v918_v26 = vcombine.low %v1080_v63, %v1082_v23 }
 0x1de   :  { %v1086_v28 = vpop.eup %1085  ;;  %1105 = vrcp.f32 %v867_v21 }
 0x1df   :  { %v1088_v32 = vpop.eup %1087  ;;  %1107 = vrcp.f32 %v868_v22  ;;  %v919_v33 = vcombine.low %v1084_v25, %v1086_v28  ;;  %934 = vst [vmem:[%s1486_s4] sm:$0xff] %v918_v26 }
 0x1e0   :  { %v1090_v34 = vpop.eup %1089  ;;  %1109 = vrcp.f32 %v869_v24 }
 0x1e1   :  { %v1092_v9 = vpop.eup %1091  ;;  %v920_v29 = vcombine.low %v1088_v32, %v1090_v34  ;;  %935 = vst [vmem:[%s1486_s4 + $0x8] sm:$0xff] %v919_v33 }
 0x1e2   :  { %v1094_v3 = vpop.eup %1093 }
 0x1e3   :  { %v1096_v38 = vpop.eup %1095  ;;  %v921_v39 = vcombine.low %v1092_v9, %v1094_v3  ;;  %936 = vst [vmem:[%s1486_s4 + $0x10] sm:$0xff] %v920_v29 }
 0x1e4   :  { %v1098_v41 = vpop.eup %1097 }
 0x1e5   :  { %v1100_v42 = vpop.eup %1099  ;;  %v922_v43 = vcombine.low %v1096_v38, %v1098_v41  ;;  %937 = vst [vmem:[%s1486_s4 + $0x18] sm:$0xff] %v921_v39 }
 0x1e6   :  { %v1102_v45 = vpop.eup %1101 }
 0x1e7   :  { %v1104_v47 = vpop.eup %1103  ;;  %v923_v48 = vcombine.low %v1100_v42, %v1102_v45  ;;  %938 = vst [vmem:[%s1486_s4 + $0x20] sm:$0xff] %v922_v43 }
 0x1e8   :  { %v1106_v49 = vpop.eup %1105 }
 0x1e9   :  { %v1108_v44 = vpop.eup %1107  ;;  %v924_v50 = vcombine.low %v1104_v47, %v1106_v49  ;;  %939 = vst [vmem:[%s1486_s4 + $0x28] sm:$0xff] %v923_v48 }
 0x1ea   :  { %v1110_v37 = vpop.eup %1109 }
 0x1eb   :  { %v925_v52 = vcombine.low %v1108_v44, %v1110_v37  ;;  %940 = vst [vmem:[%s1486_s4 + $0x30] sm:$0xff] %v924_v50 }
 0x1ed   :  { %941 = vst [vmem:[%s1486_s4 + $0x38] sm:$0xff] %v925_v52 }

</bundles_post_ra>
